<compile_context>
chip_gen: v7x
topology: tpu7x:2x2x1
jax: 0.10.0
libtpu: 0.0.40
codegen_flags: <defaults>
</compile_context>

<pallas_src>
import jax
import jax.numpy as jnp
from jax import lax
from jax.experimental import pallas as pl
from jax.experimental.pallas import tpu as pltpu


def _round_up(n, m):
    return (n + m - 1) // m * m


def critic_kernel(x_ref, w1_ref, b1_ref, w2_ref, b2_ref, w3_ref, b3_ref, o_ref):
    """One batch tile of the fused MLP, computed in (features, batch) form."""
    mm_dtype = w1_ref.dtype                       # bf16 (or f32 if requested)
    x = x_ref[...].astype(mm_dtype)               # (TB, in) -- natural layout, cheap cast

    # Layer 1: (H, TB) = W1 (H, in) @ x^T.  Contraction on both last dims; the
    # operand transpose rides the MXU/XLU path instead of a wrapper HBM pass.
    h = lax.dot_general(w1_ref[...], x, (((1,), (1,)), ((), ())),
                        preferred_element_type=jnp.float32)
    # Fused bias + ReLU (f32 VPU, v5e-safe) + cast back to the MXU dtype.
    # TODO(synk): on v6e/v7x a bf16 bias+ReLU path would halve VPU/VMEM work.
    h = jnp.maximum(h + b1_ref[...], 0.0).astype(mm_dtype)        # (H, TB)

    h = jnp.dot(w2_ref[...], h, preferred_element_type=jnp.float32)
    h = jnp.maximum(h + b2_ref[...], 0.0).astype(mm_dtype)        # (H, TB)

    out = jnp.dot(w3_ref[...], h, preferred_element_type=jnp.float32)
    o_ref[...] = (out + b3_ref[...]).astype(o_ref.dtype)          # (1, TB) lane-dense store


def critic_forward(x, params, *, block_b=8192, compute_dtype=jnp.bfloat16):
    """x: (B, in_features) f32; params in PyTorch layout (W: (out,in), b: (out,)).

    Returns (B, 1) float32, matching Critic.forward semantics.
    """
    w1, b1, w2, b2, w3, b3 = params
    B, in_features = x.shape
    hidden = w1.shape[0]

    # Batch lives on the 128-lane axis -> tile must be a multiple of 128.
    b128 = _round_up(max(B, 1), 128)
    half = _round_up(pl.cdiv(b128, 2), 128)       # >=2 tiles when possible (v7x: 2 TCs)
    tb = max(128, min(_round_up(block_b, 128), b128, half))
    n_tiles = pl.cdiv(B, tb)                      # ragged last tile handled by Pallas

    # Tiny weights feed the MXU -> compute dtype; biases stay f32 for the VPU path.
    w1c = w1.astype(compute_dtype)
    w2c = w2.astype(compute_dtype)
    w3c = w3.astype(compute_dtype)
    b1c = b1.reshape(hidden, 1).astype(jnp.float32)
    b2c = b2.reshape(hidden, 1).astype(jnp.float32)
    b3c = b3.reshape(1, 1).astype(jnp.float32)

    # Full-array blocks with constant index_map => resident in VMEM across the grid
    # while the x DMA double-buffers under compute.
    resident = lambda a: pl.BlockSpec(a.shape, lambda i: (0, 0))

    param_bytes = sum(int(a.size) * a.dtype.itemsize
                      for a in (w1c, b1c, w2c, b2c, w3c, b3c))
    cost = pl.CostEstimate(
        flops=2 * B * (in_features * hidden + hidden * hidden + hidden),
        transcendentals=0,
        bytes_accessed=int(x.size) * x.dtype.itemsize + B * 4 + param_bytes)

    # TODO(synk): for block_b >= 16K on v5e (16 MiB scoped default) or v7x
    # (32 MiB scoped / 64 MiB physical), set vmem_limit_bytes explicitly.
    outT = pl.pallas_call(
        critic_kernel,
        out_shape=jax.ShapeDtypeStruct((1, B), jnp.float32),
        grid=(n_tiles,),
        in_specs=[
            pl.BlockSpec((tb, in_features), lambda i: (i, 0)),   # x tile: pipelined DMA
            resident(w1c), resident(b1c),
            resident(w2c), resident(b2c),
            resident(w3c), resident(b3c),
        ],
        out_specs=pl.BlockSpec((1, tb), lambda i: (0, i)),
        compiler_params=pltpu.CompilerParams(
            dimension_semantics=("parallel",)),   # v7x: batch tiles split across 2 TCs
        cost_estimate=cost,
    )(x, w1c, b1c, w2c, b2c, w3c, b3c)

    return outT.T                                  # (B, 1) f32


def init_params(key, in_features, hidden=32):
    """PyTorch-layout params with nn.Linear-style U(-1/sqrt(fan_in), 1/sqrt(fan_in)) init."""
    ks = jax.random.split(key, 6)

    def lin(kw, kb, fan_in, fan_out):
        bound = 1.0 / jnp.sqrt(jnp.float32(fan_in))
        w = jax.random.uniform(kw, (fan_out, fan_in), jnp.float32, -bound, bound)
        b = jax.random.uniform(kb, (fan_out,), jnp.float32, -bound, bound)
        return w, b

    w1, b1 = lin(ks[0], ks[1], in_features, hidden)
    w2, b2 = lin(ks[2], ks[3], hidden, hidden)
    w3, b3 = lin(ks[4], ks[5], hidden, 1)
    return (w1, b1, w2, b2, w3, b3)


def critic_ref(x, params, compute_dtype=jnp.float32):
    """Pure-JAX reference; optionally emulates the kernel's MXU input dtype."""
    w1, b1, w2, b2, w3, b3 = params
    c = lambda a: a.astype(compute_dtype)
    h1 = jnp.maximum(
        jnp.dot(c(x), c(w1).T, preferred_element_type=jnp.float32) + b1, 0.0)
    h2 = jnp.maximum(
        jnp.dot(c(h1), c(w2).T, preferred_element_type=jnp.float32) + b2, 0.0)
    return jnp.dot(c(h2), c(w3).T, preferred_element_type=jnp.float32) + b3


if __name__ == "__main__":
    key = jax.random.PRNGKey(0)
    k_x, k_p = jax.random.split(key)

    batch, in_features, hidden = 200, 16, 32       # B not a multiple of 128 -> ragged last tile
    x = jax.random.normal(k_x, (batch, in_features), jnp.float32)
    params = init_params(k_p, in_features, hidden)

    # Default block_b collapses to two 128-lane tiles here -> exercises the
    # pipelined multi-tile grid, the >=2-tile (megacore) path, and the partial
    # last block, with no wrapper pad/transpose pass over x.
    out = critic_forward(x, params)
    out = jax.block_until_ready(out)

    assert out.shape == (batch, 1), out.shape

    # Tight check vs. a reference that feeds the MXU the same bf16 inputs (f32 accum).
    ref_bf16 = critic_ref(x, params, compute_dtype=jnp.bfloat16)
    assert jnp.allclose(out, ref_bf16, atol=1e-3, rtol=1e-3), (
        float(jnp.max(jnp.abs(out - ref_bf16))))

    # Loose sanity check vs. the pure-f32 reference (bf16 rounding budget).
    ref_f32 = critic_ref(x, params, compute_dtype=jnp.float32)
    assert jnp.allclose(out, ref_f32, atol=5e-2, rtol=5e-2), (
        float(jnp.max(jnp.abs(out - ref_f32))))

    print("KERNEL_OK")
</pallas_src>

<mosaic_0001>
module attributes {stable_mosaic.version = 11 : i64} {
  func.func @critic_kernel(%arg0: i32, %arg1: memref<128x16xf32, #tpu.memory_space<vmem>>, %arg2: memref<32x16xbf16, #tpu.memory_space<vmem>>, %arg3: memref<32x1xf32, #tpu.memory_space<vmem>>, %arg4: memref<32x32xbf16, #tpu.memory_space<vmem>>, %arg5: memref<32x1xf32, #tpu.memory_space<vmem>>, %arg6: memref<1x32xbf16, #tpu.memory_space<vmem>>, %arg7: memref<1x1xf32, #tpu.memory_space<vmem>>, %arg8: memref<1x128xf32, #tpu.memory_space<vmem>>) attributes {dimension_semantics = [#tpu.dimension_semantics<parallel>], iteration_bounds = array<i64: 2>, scalar_prefetch = 0 : i64, scratch_operands = 0 : i64, tpu.core_type = #tpu.core_type<tc>, window_params = [{transform_indices = @transform_0, window_bounds = array<i64: 128, 16>}, {pipeline_mode = #tpu.pipeline_mode<synchronous>, transform_indices = @transform_1, window_bounds = array<i64: 32, 16>}, {pipeline_mode = #tpu.pipeline_mode<synchronous>, transform_indices = @transform_2, window_bounds = array<i64: 32, 1>}, {pipeline_mode = #tpu.pipeline_mode<synchronous>, transform_indices = @transform_3, window_bounds = array<i64: 32, 32>}, {pipeline_mode = #tpu.pipeline_mode<synchronous>, transform_indices = @transform_4, window_bounds = array<i64: 32, 1>}, {pipeline_mode = #tpu.pipeline_mode<synchronous>, transform_indices = @transform_5, window_bounds = array<i64: 1, 32>}, {pipeline_mode = #tpu.pipeline_mode<synchronous>, transform_indices = @transform_6, window_bounds = array<i64: 1, 1>}, {transform_indices = @transform_7, window_bounds = array<i64: 1, 128>}]} {
    %c0 = arith.constant 0 : index
    %c0_0 = arith.constant 0 : index
    %0 = vector.load %arg1[%c0, %c0_0] : memref<128x16xf32, #tpu.memory_space<vmem>>, vector<128x16xf32>
    %1 = arith.truncf %0 : vector<128x16xf32> to vector<128x16xbf16>
    %c0_1 = arith.constant 0 : index
    %c0_2 = arith.constant 0 : index
    %2 = vector.load %arg2[%c0_1, %c0_2] : memref<32x16xbf16, #tpu.memory_space<vmem>>, vector<32x16xbf16>
    %cst = arith.constant dense<0.000000e+00> : vector<32x128xf32>
    %3 = tpu.matmul %2, %1, %cst {dimension_numbers = #tpu.dot_dimension_numbers<[1], [1], [0], [0], [0, 0, 1, 0], [], []>} : vector<32x16xbf16>, vector<128x16xbf16>, vector<32x128xf32> -> vector<32x128xf32>
    %c0_3 = arith.constant 0 : index
    %c0_4 = arith.constant 0 : index
    %4 = vector.load %arg3[%c0_3, %c0_4] : memref<32x1xf32, #tpu.memory_space<vmem>>, vector<32x1xf32>
    %5 = vector.broadcast %4 : vector<32x1xf32> to vector<32x128xf32>
    %6 = arith.addf %3, %5 : vector<32x128xf32>
    %cst_5 = arith.constant 0.000000e+00 : f32
    %7 = vector.broadcast %cst_5 : f32 to vector<32x128xf32>
    %8 = arith.maximumf %6, %7 : vector<32x128xf32>
    %9 = arith.truncf %8 : vector<32x128xf32> to vector<32x128xbf16>
    %c0_6 = arith.constant 0 : index
    %c0_7 = arith.constant 0 : index
    %10 = vector.load %arg4[%c0_6, %c0_7] : memref<32x32xbf16, #tpu.memory_space<vmem>>, vector<32x32xbf16>
    %cst_8 = arith.constant dense<0.000000e+00> : vector<32x128xf32>
    %11 = tpu.matmul %10, %9, %cst_8 {dimension_numbers = #tpu.dot_dimension_numbers<[1], [0], [0], [1], [0, 0, 1, 1], [], []>} : vector<32x32xbf16>, vector<32x128xbf16>, vector<32x128xf32> -> vector<32x128xf32>
    %c0_9 = arith.constant 0 : index
    %c0_10 = arith.constant 0 : index
    %12 = vector.load %arg5[%c0_9, %c0_10] : memref<32x1xf32, #tpu.memory_space<vmem>>, vector<32x1xf32>
    %13 = vector.broadcast %12 : vector<32x1xf32> to vector<32x128xf32>
    %14 = arith.addf %11, %13 : vector<32x128xf32>
    %cst_11 = arith.constant 0.000000e+00 : f32
    %15 = vector.broadcast %cst_11 : f32 to vector<32x128xf32>
    %16 = arith.maximumf %14, %15 : vector<32x128xf32>
    %17 = arith.truncf %16 : vector<32x128xf32> to vector<32x128xbf16>
    %c0_12 = arith.constant 0 : index
    %c0_13 = arith.constant 0 : index
    %18 = vector.load %arg6[%c0_12, %c0_13] : memref<1x32xbf16, #tpu.memory_space<vmem>>, vector<1x32xbf16>
    %cst_14 = arith.constant dense<0.000000e+00> : vector<1x128xf32>
    %19 = tpu.matmul %18, %17, %cst_14 {dimension_numbers = #tpu.dot_dimension_numbers<[1], [0], [0], [1], [0, 0, 1, 1], [], []>} : vector<1x32xbf16>, vector<32x128xbf16>, vector<1x128xf32> -> vector<1x128xf32>
    %c0_15 = arith.constant 0 : index
    %c0_16 = arith.constant 0 : index
    %20 = vector.load %arg7[%c0_15, %c0_16] : memref<1x1xf32, #tpu.memory_space<vmem>>, vector<1x1xf32>
    %21 = vector.broadcast %20 : vector<1x1xf32> to vector<1x128xf32>
    %22 = arith.addf %19, %21 : vector<1x128xf32>
    %c0_17 = arith.constant 0 : index
    %c0_18 = arith.constant 0 : index
    %23 = vector.load %arg8[%c0_17, %c0_18] : memref<1x128xf32, #tpu.memory_space<vmem>>, vector<1x128xf32>
    tpu.vector_store %arg8[%c0_17, %c0_18], %22 {strides = array<i32>} : memref<1x128xf32, #tpu.memory_space<vmem>>, vector<1x128xf32>,
    return
  }
  func.func @transform_0(%arg0: i32) -> (i32, i32) {
    %c0_i32 = arith.constant 0 : i32
    %c0_i32_0 = arith.constant 0 : i32
    return %arg0, %c0_i32 : i32, i32
  }
  func.func @transform_1(%arg0: i32) -> (i32, i32) {
    %c0_i32 = arith.constant 0 : i32
    %c0_i32_0 = arith.constant 0 : i32
    %c0_i32_1 = arith.constant 0 : i32
    return %c0_i32, %c0_i32_0 : i32, i32
  }
  func.func @transform_2(%arg0: i32) -> (i32, i32) {
    %c0_i32 = arith.constant 0 : i32
    %c0_i32_0 = arith.constant 0 : i32
    %c0_i32_1 = arith.constant 0 : i32
    return %c0_i32, %c0_i32_0 : i32, i32
  }
  func.func @transform_3(%arg0: i32) -> (i32, i32) {
    %c0_i32 = arith.constant 0 : i32
    %c0_i32_0 = arith.constant 0 : i32
    %c0_i32_1 = arith.constant 0 : i32
    return %c0_i32, %c0_i32_0 : i32, i32
  }
  func.func @transform_4(%arg0: i32) -> (i32, i32) {
    %c0_i32 = arith.constant 0 : i32
    %c0_i32_0 = arith.constant 0 : i32
    %c0_i32_1 = arith.constant 0 : i32
    return %c0_i32, %c0_i32_0 : i32, i32
  }
  func.func @transform_5(%arg0: i32) -> (i32, i32) {
    %c0_i32 = arith.constant 0 : i32
    %c0_i32_0 = arith.constant 0 : i32
    %c0_i32_1 = arith.constant 0 : i32
    return %c0_i32, %c0_i32_0 : i32, i32
  }
  func.func @transform_6(%arg0: i32) -> (i32, i32) {
    %c0_i32 = arith.constant 0 : i32
    %c0_i32_0 = arith.constant 0 : i32
    %c0_i32_1 = arith.constant 0 : i32
    return %c0_i32, %c0_i32_0 : i32, i32
  }
  func.func @transform_7(%arg0: i32) -> (i32, i32) {
    %c0_i32 = arith.constant 0 : i32
    %c0_i32_0 = arith.constant 0 : i32
    return %c0_i32, %arg0 : i32, i32
  }
}

</mosaic_0001>

<bundles_post_ra>
// kernel: tpu_custom_call.1
= control target key start
LH: loop header
LB: loop body
LE: loop exit
PB: predicated region body
PF: predicated region fallthrough
CT: control target
= control target key end

     0   :  { %s1087_s0 = inlined_call_operand.vmem [shape: f32[200,16], index: 0, kind: input, shape index: {}]   ;;  %s1088_s1 = inlined_call_operand.vmem [shape: bf16[32,16], index: 1, kind: input, shape index: {}]   ;;  %s1089_s2 = inlined_call_operand.vmem [shape: f32[32,1], index: 2, kind: input, shape index: {}]   ;;  %s1090_s3 = inlined_call_operand.vmem [shape: bf16[32,32], index: 3, kind: input, shape index: {}]   ;;  %s1091_s4 = inlined_call_operand.vmem [shape: f32[32,1], index: 4, kind: input, shape index: {}]   ;;  %s1092_s5 = inlined_call_operand.vmem [shape: bf16[1,32], index: 5, kind: input, shape index: {}]   ;;  %s1093_s6 = inlined_call_operand.<no memory space> [shape: f32[1,1], index: 6, kind: input, shape index: {}]   ;;  %s1094_s7 = inlined_call_operand.hbm [shape: f32[1,200], index: 7, kind: output, shape index: {}]  }
   0x1   :  { %v12_v0 = vstv %s1093_s6 }
   0x2   :  { %13 = vst [vmem:[#allocation2] sm:$0x1] %v12_v0 }
   0x3   :  { %14 = vsyncpa [#allocation4], 0 }
   0x4   :  { %16 = vsyncpa [#allocation4 + $0x1], 0  ;;  %s910_s26 = smov 0   ;;  %s912_s27 = smov 0  }
   0x5   :  { %s914_s28 = smov 0   ;;  %s916_s29 = smov 0  }
   0x6 LB: > { %s671_s6 = sadd.s32 4294967295, %s861_s29   ;;  %s672_s30 = sadd.s32 4294967294, %s861_s29   ;;  %s861_s29 = sphi %s916_s29, %s1100_s29   ;;  %s857_s28 = sphi %s914_s28, %s1099_s28   ;;  %s853_s27 = sphi %s912_s27, %s1098_s27   ;;  %s849_s26 = sphi %s910_s26, %s1097_s26  }
   0x7   : > { %s933_s8 = sadd.s32 1, %s861_s29   ;;  %s181_s9 = sadd.s32 1, %s857_s28 }
   0x8   : > { %s178_s10 = ssub.s32 %s861_s29, %s933_s8  ;;  %p191_p0 = scmp.ne.s32.totalorder %s857_s28, %s853_s27 }
   0x9   : > { %p179_p1 = scmp.eq.s32.totalorder %s178_s10, 0  ;;  %p192_p2 = scmp.eq.s32.totalorder %s671_s6, 1 }
   0xa   : > { %p197_p3 = scmp.ne.s32.totalorder %s853_s27, %s849_s26  ;;  %p198_p4 = scmp.eq.s32.totalorder %s672_s30, 1 }
   0xb   : > { %s943_s11 = scalar_select %p179_p1, %s857_s28, %s181_s9  }
   0xc   : > { %p945_p5 = por %p192_p2, %p191_p0  ;;  %p949_p6 = por %p198_p4, %p197_p3 }
   0xd   : > { %p675_p7 = scmp.ge.s32.totalorder %s861_s29, 1  ;;  %p251_p8 = scmp.lt.s32.totalorder %s861_s29, 3 }
   0xf   : > { %p252_p9 = pnand %p675_p7, %p251_p8 }
  0x10   : > { %s955_s14 = sshll.u32 (!%p252_p9), %s671_s6, 4  ;;  %v795_v1 = vld [vmem:[%s1088_s1] sm:$0xff] (!%p252_p9)   ;;  %vm363_vm0 = vcmask (!%p252_p9), 130048   ;;  %v863_v3 = vmov (!%p252_p9), 0   ;;  %v331_v4 = vld [vmem:[%s1089_s2 + $0x10] sm:$0xff] (!%p252_p9)  ;;  %v330_v5 = vld [vmem:[%s1089_s2 + $0x8] sm:$0xff] (!%p252_p9) }
  0x11   : > { %255 = sbr.rel (%p252_p9) target bundleno = 780 (0x30c), region = 48  ;;  %p291_p10 = scmp.lt.s32.totalorder (!%p252_p9), %s955_s14, 24  ;;  %v329_v2 = vld [vmem:[%s1089_s2] sm:$0xff] (!%p252_p9)  ;;  %723 = vmatprep.mubr.msk.bf16.mxu0 (!%p252_p9), %vm363_vm0, %v795_v1  ;;  %793 = vset.pattern.permute.xlu0 (!%p252_p9), %v863_v3  ;;  %v332_v6 = vld [vmem:[%s1089_s2 + $0x18] sm:$0xff] (!%p252_p9)  ;;  %v454_v15 = vld [vmem:[%s1091_s4 + $0x8] sm:$0xff] (!%p252_p9)  ;;  %vm487_vm1 = vcmask (!%p252_p9), 261120  }
  0x12   : > { %335 = vperm.xlu0 (!%p252_p9), %793, %v329_v2   ;;  %794 = vset.pattern.permute.xlu1 (!%p252_p9), %v863_v3  ;;  %v453_v13 = vld [vmem:[%s1091_s4] sm:$0xff] (!%p252_p9)  ;;  %v455_v18 = vld [vmem:[%s1091_s4 + $0x10] sm:$0xff] (!%p252_p9)  ;;  %v456_v19 = vld [vmem:[%s1091_s4 + $0x18] sm:$0xff] (!%p252_p9)  ;;  %v864_v1 = vmov (!%p252_p9), 0.0   ;;  %vm865_vm2 = vmmov (!%p252_p9), 0   ;;  %s284_s16 = sand.u32 (!%p252_p9), 1, %s853_s27   ;;  %s1045_s21 = scalar_lea.hbm (!%p252_p9), %s1094_s7, %s955_s14 }
  0x13   : > { %345 = vperm.xlu1 (!%p252_p9), %794, %v331_v4   ;;  %v550_v22 = vld [vmem:[#allocation2] sm:$0x1] (!%p252_p9)  ;;  %v796_v44 = vld [vmem:[%s1088_s1 + $0x8] sm:$0xff] (!%p252_p9)   ;;  %s285_s17 = scalar_lea.vmem (!%p252_p9), [#allocation3], %s284_s16  ;;  %s866_s24 = smov (!%p252_p9), [#allocation3]  }
  0x14   : > { %v797_v45 = vld [vmem:[%s1090_s3] sm:$0xff] (!%p252_p9)   ;;  %v798_v0 = vld [vmem:[%s1090_s3 + $0x8] sm:$0xff] (!%p252_p9)   ;;  %s617_s18 = sshll.u32 (!%p252_p9), %s285_s17, 4  ;;  %s803_s25 = sshll.u32 (!%p252_p9), %s866_s24, 4  ;;  %s1047_s18 = int_to_ptr.vmem [resolvable:$true] %s617_s18  ;;  %s804_s25 = int_to_ptr.vmem [resolvable:$false] %s803_s25 }
  0x15   : > { %731 = vmatprep.mubr.msk.bf16.mxu1 (!%p252_p9), %vm487_vm1, %v797_v45  ;;  %s799_s23 = scalar_lea.vmem (!%p252_p9), %s1047_s18, 16  ;;  %s805_s6 = scalar_lea.vmem (!%p252_p9), %s804_s25, 32 }
  0x16   : > { %340 = vperm.xlu0 (!%p252_p9), %793, %v330_v5   ;;  %p800_p11 = scmp.ne.s32.totalorder (!%p252_p9), %s1047_s18, %s799_s23  ;;  %p806_p0 = scmp.lt.s32.totalorder (!%p252_p9), %s1047_s18, %s804_s25 }
  0x17   : > { %350 = vperm.xlu1 (!%p252_p9), %794, %v332_v6   ;;  %p807_p1 = scmp.lt.s32.totalorder (!%p252_p9), %s805_s6, %s799_s23 }
  0x18   : > { %s292_s19 = scalar_select %p291_p10, %s955_s14, 24 }
  0x19   : > { %p801_p12 = pnand %p800_p11, %p945_p5  ;;  %p808_p2 = por %p807_p1, %p806_p0 }
  0x1a   : > { %s677_s22 = sshll.u32 %s292_s19, 3  ;;  %459 = vperm.xlu0 %793, %v453_v13  }
  0x1b   : > { %s975_s30 = scalar_lea.vmem %s1087_s0, %s677_s22  ;;  %464 = vperm.xlu1 %794, %v454_v15   ;;  %s605_s22 = scalar_lea.sflag [#allocation4], %s284_s16 }
  0x1c   : > { %v301_v7 = vld [vmem:[%s975_s30] sm:$0xff]  ;;  %v302_v8 = vld [vmem:[%s975_s30 + $0x8] sm:$0xff]  ;;  %v303_v9 = vld [vmem:[%s975_s30 + $0x10] sm:$0xff]  ;;  %p802_p13 = pneg %p801_p12 }
  0x1d   : > { %v317_v10 = vpack.c.bf16 %v302_v8, %v301_v7  ;;  %v304_v11 = vld [vmem:[%s975_s30 + $0x18] sm:$0xff]  ;;  %v305_v16 = vld [vmem:[%s975_s30 + $0x20] sm:$0xff]  ;;  %v306_v17 = vld [vmem:[%s975_s30 + $0x28] sm:$0xff] }
  0x1e   : > { %v318_v12 = vpack.c.bf16 %v304_v11, %v303_v9  ;;  %v319_v21 = vpack.c.bf16 %v306_v17, %v305_v16  ;;  %469 = vperm.xlu0 %793, %v455_v18   ;;  %v307_v23 = vld [vmem:[%s975_s30 + $0x30] sm:$0xff]  ;;  %v308_v24 = vld [vmem:[%s975_s30 + $0x38] sm:$0xff]  ;;  %v309_v27 = vld [vmem:[%s975_s30 + $0x40] sm:$0xff]  ;;  %p809_p3 = pnand %p808_p2, %p802_p13 }
  0x1f   : > { %743 = vmatprep.subr.msk.bf16.mxu0 %vm363_vm0, %v317_v10  ;;  %v371_v14 = vsel %vm363_vm0, %v317_v10, 0  ;;  %474 = vperm.xlu1 %794, %v456_v19   ;;  %v320_v26 = vpack.c.bf16 %v308_v24, %v307_v23  ;;  %v310_v28 = vld [vmem:[%s975_s30 + $0x48] sm:$0xff]  ;;  %v311_v31 = vld [vmem:[%s975_s30 + $0x50] sm:$0xff]  ;;  %v312_v32 = vld [vmem:[%s975_s30 + $0x58] sm:$0xff] }
  0x20   : > { %708 = vmatpush3.bf16.xpose.msra.mxu0 %v371_v14  ;;  %v374_v20 = vsel %vm363_vm0, %v318_v12, 0  ;;  %v377_v25 = vsel %vm363_vm0, %v319_v21, 0  ;;  %v321_v30 = vpack.c.bf16 %v310_v28, %v309_v27  ;;  %v322_v34 = vpack.c.bf16 %v312_v32, %v311_v31  ;;  %v313_v35 = vld [vmem:[%s975_s30 + $0x60] sm:$0xff]  ;;  %v314_v36 = vld [vmem:[%s975_s30 + $0x68] sm:$0xff]  ;;  %v315_v39 = vld [vmem:[%s975_s30 + $0x70] sm:$0xff] }
  0x21   : > { %744 = vmatprep.subr.msk.bf16.mxu0 %vm363_vm0, %v318_v12  ;;  %v380_v29 = vsel %vm363_vm0, %v320_v26, 0  ;;  %v323_v38 = vpack.c.bf16 %v314_v36, %v313_v35  ;;  %v316_v40 = vld [vmem:[%s975_s30 + $0x78] sm:$0xff] }
  0x22   : > { %553 = vperm.xlu0 %793, %v550_v22   ;;  %v383_v33 = vsel %vm363_vm0, %v321_v30, 0  ;;  %v386_v37 = vsel %vm363_vm0, %v322_v34, 0  ;;  %v324_v42 = vpack.c.bf16 %v316_v40, %v315_v39 }
  0x23   : > { %v389_v41 = vsel %vm363_vm0, %v323_v38, 0 }
  0x24   : > { %v392_v43 = vsel %vm363_vm0, %v324_v42, 0 }
  0x28   : > { %710 = vmatpush3.bf16.xpose.msra.mxu0 %v374_v20  ;;  %v549_v20 = vld [vmem:[%s1092_s5] sm:$0x1] }
  0x29   : > { %745 = vmatprep.subr.msk.bf16.mxu0 %vm363_vm0, %v319_v21  ;;  %v556_v21 = vlaneseq }
  0x2b   : > { %v557_v22 = vshrl.u32 %v556_v21, 7 }
  0x2d   : > { %v558_v23 = vsub.s32 0, %v557_v22 }
  0x30   : > { %712 = vmatpush3.bf16.xpose.msra.mxu0 %v377_v25 }
  0x31   : > { %746 = vmatprep.subr.msk.bf16.mxu0 %vm363_vm0, %v320_v26 }
  0x38   : > { %714 = vmatpush3.bf16.xpose.msra.mxu0 %v380_v29 }
  0x39   : > { %747 = vmatprep.subr.msk.bf16.mxu0 %vm363_vm0, %v321_v30 }
  0x40   : > { %716 = vmatpush3.bf16.xpose.msra.mxu0 %v383_v33 }
  0x41   : > { %748 = vmatprep.subr.msk.bf16.mxu0 %vm363_vm0, %v322_v34 }
  0x48   : > { %718 = vmatpush3.bf16.xpose.msra.mxu0 %v386_v37 }
  0x49   : > { %749 = vmatprep.subr.msk.bf16.mxu0 %vm363_vm0, %v323_v38 }
  0x50   : > { %720 = vmatpush3.bf16.xpose.msra.mxu0 %v389_v41 }
  0x51   : > { %750 = vmatprep.subr.msk.bf16.mxu0 %vm363_vm0, %v324_v42 }
  0x58   : > { %722 = vmatpush3.bf16.xpose.msra.mxu0 %v392_v43 }
  0x5f   : > { %724 = vmatmul.mubr.msk.bf16.vlgmr.msra.gmra.mrb[0].mxu0 %vm363_vm0, %v796_v44 }
  0x91   : > { %v336_v47 = vpop.permute.xlu0 %335 }
  0x92   : > { %v346_v46 = vpop.permute.xlu1 %345 }
  0x95   : > { %v341_v54 = vpop.permute.xlu0 %340 }
  0x96   : > { %v351_v51 = vpop.permute.xlu1 %350 }
  0x99   : > { %v460_v2 = vpop.permute.xlu0 %459 }
  0x9a   : > { %v465_v3 = vpop.permute.xlu1 %464 }
  0x9d   : > { %v470_v4 = vpop.permute.xlu0 %469 }
  0x9e   : > { %v475_v8 = vpop.permute.xlu1 %474 }
  0xa1   : > { %v554_v24 = vpop.permute.xlu0 %553 }
  0xa2   : > { %v559_v25 = vrot.slane %v554_v24, %v558_v23 }
 0x132   : > { %v725_v48 = vpop.f32.mrb[0].mxu0 }
 0x133   : > { %v437_v49 = vadd.f32 %v725_v48, %v346_v46  ;;  %v428_v50 = vpop.f32.mrb[1].mxu0 }
 0x134   : > { %v429_v52 = vadd.f32 %v428_v50, %v336_v47  ;;  %v726_v53 = vpop.f32.mrb[2].mxu0 }
 0x135   : > { %v440_v55 = vadd.f32 %v726_v53, %v351_v51  ;;  %v431_v56 = vpop.f32.mrb[3].mxu0  ;;  %v445_v58 = vmax.f32 %v437_v49, 0.0 }
 0x136   : > { %v432_v57 = vadd.f32 %v431_v56, %v341_v54  ;;  %v443_v60 = vmax.f32 %v429_v52, 0.0 }
 0x137   : > { %v446_v59 = vmax.f32 %v440_v55, 0.0 }
 0x138   : > { %v444_v61 = vmax.f32 %v432_v57, 0.0 }
 0x139   : > { %v448_v62 = vpack.c.bf16 %v446_v59, %v445_v58 }
 0x13a   : > { %v447_v63 = vpack.c.bf16 %v444_v61, %v443_v60 }
 0x13c   : > { %727 = vmatprep.subr.bf16.mxu1 %v447_v63 }
 0x13d   : > { %728 = vmatpush3.bf16.msra.mxu1 %v447_v63 }
 0x13e   : > { %729 = vmatprep.subr.bf16.mxu1 %v448_v62 }
 0x141   : > { %730 = vmatpush3.bf16.msra.mxu1 %v448_v62 }
 0x142   : > { %735 = vmatprep.subr.bf16.mxu1 %v864_v1 }
 0x144   : > { %732 = vmatmul.mubr.msk.bf16.vlgmr.msra.gmra.mrb[0].mxu1 %vm487_vm1, %v798_v0 }
 0x145   : > { %739 = vmatprep.mubr.msk.bf16.mxu1 %vm865_vm2, %v864_v1 }
 0x217   : > { %v733_v5 = vpop.f32.mrb[0].mxu1 }
 0x218   : > { %v537_v6 = vadd.f32 %v733_v5, %v470_v4  ;;  %v528_v7 = vpop.f32.mrb[1].mxu1 }
 0x219   : > { %v529_v9 = vadd.f32 %v528_v7, %v460_v2  ;;  %v734_v10 = vpop.f32.mrb[2].mxu1 }
 0x21a   : > { %v540_v11 = vadd.f32 %v734_v10, %v475_v8  ;;  %v531_v12 = vpop.f32.mrb[3].mxu1  ;;  %v545_v14 = vmax.f32 %v537_v6, 0.0 }
 0x21b   : > { %v532_v13 = vadd.f32 %v531_v12, %v465_v3  ;;  %v543_v16 = vmax.f32 %v529_v9, 0.0 }
 0x21c   : > { %v546_v15 = vmax.f32 %v540_v11, 0.0 }
 0x21d   : > { %v544_v17 = vmax.f32 %v532_v13, 0.0 }
 0x21e   : > { %v548_v18 = vpack.c.bf16 %v546_v15, %v545_v14 }
 0x21f   : > { %v547_v19 = vpack.c.bf16 %v544_v17, %v543_v16 }
 0x221   : > { %736 = vmatpush3.bf16.msra.mxu1 %v547_v19 }
 0x222   : > { %737 = vmatprep.subr.bf16.mxu1 %v864_v1 }
 0x225   : > { %738 = vmatpush3.bf16.msra.mxu1 %v548_v18 }
 0x228   : > { %740 = vmatmul.mubr.msk.bf16.vlgmr.msra.gmra.mrb[4].mxu1 %vm487_vm1, %v549_v20 }
 0x2fb   : > { %v597_v26 = vpop.f32.mrb[4].mxu1 }
 0x2fc   : > { %v598_v27 = vadd.f32 %v597_v26, %v559_v25  ;;  %v741_v28 = vpop.f32.mrb[5].mxu1 }
 0x2fd   : > { %v600_v29 = vpop.f32.mrb[6].mxu1 }
 0x2fe   : > { %603 = vst [vmem:[%s285_s17] sm:$0x1] %v598_v27  ;;  %v742_v30 = vpop.f32.mrb[7].mxu1 }
 0x2ff   : > { %812 = shalt.err (!%p809_p3)
}
 0x300   : > { %s813_s14 = scalar_lea.hbm %s1045_s21, 16  ;;  %s817_s10 = scalar_lea.hbm %s1094_s7, 32 }
 0x301   : > { %p814_p4 = scmp.ne.s32.totalorder %s1045_s21, %s813_s14  ;;  %p818_p9 = scmp.lt.u32.totalorder %s1045_s21, %s1094_s7 }
 0x302   : > { %p819_p10 = scmp.lt.u32.totalorder %s817_s10, %s813_s14  ;;  %p821_p12 = scmp.lt.u32.totalorder %s813_s14, %s1045_s21 }
 0x303   : > { %p815_p7 = pnand %p814_p4, %p945_p5 }
 0x304   : > { %p820_p11 = por %p819_p10, %p818_p9 }
 0x305   : > { %p816_p8 = pneg %p815_p7 }
 0x306   : > { %p822_p13 = por %p821_p12, %p820_p11 }
 0x308   : > { %p823_p0 = pnand %p822_p13, %p816_p8 }
 0x30a   : > { %826 = shalt.err (!%p823_p0)
}
 0x30b   : > { %751 = dma.vmem_to_hbm [thread:$0]  (%p945_p5), %s1047_s18, 16, %s1045_s21, %s605_s22  }
 0x30c PF: > { %p757_p1 = scmp.ge.s32.totalorder %s861_s29, 2  ;;  %s629_s17 = sand.u32 1, %s849_s26  }
 0x30d   : > { %s630_s19 = scalar_lea.sflag [#allocation4], %s629_s17 }
 0x30e   : > { %p754_p2 = pnand %p757_p1, %p949_p6 }
 0x310   : > { %844 = dma.done.wait (!%p754_p2), %s630_s19, 16  }
 0x311   : > { %846 = vsyncadd (!%p754_p2), %s630_s19, 4294967280  ;;  %p19_p3 = scmp.ge.s32.totalorder %s933_s8, 4   ;;  %s1097_s26 = smov %s853_s27 }
 0x312   : > { %s1098_s27 = smov %s857_s28  ;;  %s1099_s28 = smov %s943_s11 }
 0x313   : > { %s1100_s29 = smov %s933_s8  ;;  %21 = sbr.rel (!%p19_p3) target bundleno = 6 (0x6), region = 83 }
 0x31a   :  { %634 = vsyncpa [#allocation4], 1 }
 0x31b   :  { %636 = vsyncpa [#allocation4 + $0x1], 1 }

</bundles_post_ra>
